<compile_context>
chip_gen: v6e
topology: v6e:2x2x1
jax: 0.10.0
libtpu: 0.0.40
codegen_flags: <defaults>
</compile_context>

<pallas_src>
import functools
import math

import jax
import jax.numpy as jnp
from jax.experimental import pallas as pl
from jax.experimental.pallas import tpu as pltpu


# ---------------------------------------------------------------------------
# Pallas kernel: full encoder step (all layers) for one batch element.
# ---------------------------------------------------------------------------
def _dcrnn_encoder_kernel(x_ref, h_ref, a_ref, *rest, L, K, U, dins):
    """Refs (one grid step = one batch element):
         x_ref : (1, N, Din0)   layer-0 input, f32
         h_ref : (L, 1, N, U)   previous hidden states, f32
         a_ref : (N, N)         adjacency / support, bf16 (VMEM-resident)
         rest  : 4*L weight refs [w_ru bf16, b_ru f32, w_c bf16, b_c f32] + out_ref
         out   : (L, 1, N, U)   new hidden states, f32
    """
    out_ref = rest[-1]
    p_refs = rest[:-1]

    a_bf = a_ref[...]                                   # (N, N) bf16, loaded once

    def cheb_terms(feat):
        # feat: (N, W) f32 -> K diffusion terms T_0..T_{K-1}, each (N, W) f32.
        # MXU operands are bf16; the 2*A*T - T recurrence stays in f32.
        terms = [feat]
        if K > 1:
            t1 = jnp.dot(a_bf, feat.astype(jnp.bfloat16),
                         preferred_element_type=jnp.float32)
            terms.append(t1)
            tkm2, tkm1 = feat, t1
            for _ in range(2, K):
                t = 2.0 * jnp.dot(a_bf, tkm1.astype(jnp.bfloat16),
                                  preferred_element_type=jnp.float32) - tkm2
                terms.append(t)
                tkm2, tkm1 = tkm1, t
        return terms

    x = x_ref[0]                                        # (N, Din0) f32
    for l in range(L):
        w_ru = p_refs[4 * l + 0][...]                   # (K*C, 2U) bf16
        b_ru = p_refs[4 * l + 1][...]                   # (1, 2U)   f32
        w_c = p_refs[4 * l + 2][...]                    # (K*C, U)  bf16
        b_c = p_refs[4 * l + 3][...]                    # (1, U)    f32
        h = h_ref[l, 0]                                 # (N, U)    f32
        din = dins[l]

        # r / u gates: one deep (N, K*C) @ (K*C, 2U) matmul, bias added once.
        t_xh = cheb_terms(jnp.concatenate([x, h], axis=1))            # K x (N, C)
        slab_ru = jnp.concatenate(t_xh, axis=1).astype(jnp.bfloat16)  # (N, K*C)
        ru = jax.nn.sigmoid(
            jnp.dot(slab_ru, w_ru, preferred_element_type=jnp.float32) + b_ru)
        r = ru[:, :U]
        u = ru[:, U:]

        # candidate state: reuse T_k(x) columns, only re-diffuse r*h.
        t_rh = cheb_terms(r * h)                                      # K x (N, U)
        slab_c = jnp.concatenate(
            [jnp.concatenate([t_xh[k][:, :din], t_rh[k]], axis=1) for k in range(K)],
            axis=1).astype(jnp.bfloat16)                              # (N, K*C)
        c = jnp.tanh(
            jnp.dot(slab_c, w_c, preferred_element_type=jnp.float32) + b_c)

        h_new = u * h + (1.0 - u) * c                                 # (N, U) f32
        out_ref[l, 0] = h_new
        x = h_new                                                     # next layer input


# ---------------------------------------------------------------------------
# EncoderModel forward (single fused pallas_call over all layers).
# ---------------------------------------------------------------------------
def encoder_forward(inputs, adj_mx, layer_params, *, num_nodes, rnn_units,
                    max_diffusion_step, hidden_state=None):
    """inputs: (B, num_nodes*input_dim) -> (output (B, N*U), hidden (L, B, N*U))."""
    B = inputs.shape[0]
    N, U = num_nodes, rnn_units
    K = max_diffusion_step + 1
    L = len(layer_params)
    input_dim = inputs.shape[1] // N

    if hidden_state is None:
        hidden_state = jnp.zeros((L, B, N * U), jnp.float32)

    x = inputs.reshape(B, N, input_dim).astype(jnp.float32)
    h0 = hidden_state.reshape(L, B, N, U).astype(jnp.float32)
    a_bf = adj_mx.astype(jnp.bfloat16)        # MXU operand only; recurrence is f32

    flat_params = []
    dins = []
    for (w_ru, b_ru, w_c, b_c) in layer_params:
        flat_params += [w_ru.astype(jnp.bfloat16), b_ru.astype(jnp.float32),
                        w_c.astype(jnp.bfloat16), b_c.astype(jnp.float32)]
        dins.append(w_ru.shape[0] // K - U)

    kernel = functools.partial(_dcrnn_encoder_kernel,
                               L=L, K=K, U=U, dins=tuple(dins))

    in_specs = [
        pl.BlockSpec((1, N, input_dim), lambda b: (b, 0, 0)),   # x: per-batch block
        pl.BlockSpec((L, 1, N, U), lambda b: (0, b, 0, 0)),     # h: per-batch block
        pl.BlockSpec((N, N), lambda b: (0, 0)),                 # A: VMEM-resident
    ]
    for p in flat_params:                                       # weights: VMEM-resident
        in_specs.append(pl.BlockSpec(p.shape, lambda b: (0, 0)))
    out_spec = pl.BlockSpec((L, 1, N, U), lambda b: (0, b, 0, 0))

    # Advisory cost estimate (diffusion matmuls + gate matmuls + sigmoid/tanh).
    flops = 0
    transcendentals = 0
    for din in dins:
        C = din + U
        flops += B * 2 * N * N * (K - 1) * (C + U)      # diffusion ([x,h] and r*h)
        flops += B * 2 * N * (K * C) * (3 * U)          # ru (2U) + candidate (U)
        transcendentals += B * N * 3 * U                # sigmoid(2U) + tanh(U)
    bytes_accessed = (x.size * 4 + h0.size * 4 + a_bf.size * 2
                      + sum(p.size * p.dtype.itemsize for p in flat_params)
                      + L * B * N * U * 4)

    hidden_new = pl.pallas_call(
        kernel,
        out_shape=jax.ShapeDtypeStruct((L, B, N, U), jnp.float32),
        grid=(B,),
        in_specs=in_specs,
        out_specs=out_spec,
        compiler_params=pltpu.CompilerParams(
            dimension_semantics=("parallel",),          # v7x: split batches over TCs
            vmem_limit_bytes=32 * 1024 * 1024),
        cost_estimate=pl.CostEstimate(flops=int(flops),
                                      transcendentals=int(transcendentals),
                                      bytes_accessed=int(bytes_accessed)),
    )(x, h0, a_bf, *flat_params)

    hidden_new = hidden_new.reshape(L, B, N * U)        # leading-dim reshape only
    output = hidden_new[-1]
    return output, hidden_new


# ---------------------------------------------------------------------------
# Deterministic parameter init (mirrors DCGRUCell's xavier-normal weights and
# constant biases: bias_start=1.0 for the r/u gconv, 0.0 for the candidate).
# ---------------------------------------------------------------------------
def _xavier_normal(key, shape):
    fan_in, fan_out = shape
    std = math.sqrt(2.0 / (fan_in + fan_out))
    return std * jax.random.normal(key, shape, dtype=jnp.float32)


def init_dcgru_layer(key, input_dim, rnn_units, K):
    """Fused gconv weights (w_ru, b_ru, w_c, b_c).

    Row order: diffusion order k major; within each k the Din input channels then
    the U hidden channels.  NOTE: torch DCGRUCell checkpoints store rows as
    (channel major, order fastest) -- permute rows before loading real weights.
    """
    C = input_dim + rnn_units
    k_ru, k_c = jax.random.split(key)
    w_ru = _xavier_normal(k_ru, (K * C, 2 * rnn_units))
    w_c = _xavier_normal(k_c, (K * C, rnn_units))
    b_ru = jnp.full((1, 2 * rnn_units), 1.0, jnp.float32)   # bias_start = 1.0
    b_c = jnp.zeros((1, rnn_units), jnp.float32)            # bias_start = 0.0
    return w_ru, b_ru, w_c, b_c


if __name__ == "__main__":
    # Model hyper-params implied by EncoderModel.__init__
    num_nodes = 16
    num_rnn_layers = 2
    rnn_units = 32
    input_dim = 1
    max_diffusion_step = 2
    seq_len = 8            # attribute only; a single forward call is one time step
    batch_size = 2

    key = jax.random.PRNGKey(0)
    k_in, k_adj, k_p0, k_p1 = jax.random.split(key, 4)

    inputs = jax.random.normal(k_in, (batch_size, num_nodes * input_dim), jnp.float32)
    adj_raw = jax.random.uniform(k_adj, (num_nodes, num_nodes), jnp.float32)
    # Row-normalized (random-walk style) support keeps the Chebyshev recurrence
    # numerically bounded in the demo.
    adj_mx = adj_raw / jnp.sum(adj_raw, axis=1, keepdims=True)
    # TODO(synk): filter_type-dependent support preprocessing (scaled Laplacian /
    # dual random-walk matrices) happens outside this forward in the original repo;
    # the cell consumes the provided adj_mx directly, which is what we do here.

    layer_params = [
        init_dcgru_layer(k_p0, input_dim, rnn_units, max_diffusion_step + 1),
        init_dcgru_layer(k_p1, rnn_units, rnn_units, max_diffusion_step + 1),
    ]
    assert len(layer_params) == num_rnn_layers

    output, hidden = encoder_forward(
        inputs, adj_mx, layer_params,
        num_nodes=num_nodes, rnn_units=rnn_units,
        max_diffusion_step=max_diffusion_step, hidden_state=None)

    output = jax.block_until_ready(output)
    hidden = jax.block_until_ready(hidden)

    assert output.shape == (batch_size, num_nodes * rnn_units)
    assert hidden.shape == (num_rnn_layers, batch_size, num_nodes * rnn_units)
    assert bool(jnp.all(jnp.isfinite(output))) and bool(jnp.all(jnp.isfinite(hidden)))
    print("KERNEL_OK")
</pallas_src>

<mosaic_0001>
module attributes {stable_mosaic.version = 11 : i64} {
  func.func @_dcrnn_encoder_kernel(%arg0: i32, %arg1: memref<1x16x1xf32, #tpu.memory_space<vmem>>, %arg2: memref<2x1x16x32xf32, #tpu.memory_space<vmem>>, %arg3: memref<16x16xbf16, #tpu.memory_space<vmem>>, %arg4: memref<99x64xbf16, #tpu.memory_space<vmem>>, %arg5: memref<1x64xf32, #tpu.memory_space<vmem>>, %arg6: memref<99x32xbf16, #tpu.memory_space<vmem>>, %arg7: memref<1x32xf32, #tpu.memory_space<vmem>>, %arg8: memref<192x64xbf16, #tpu.memory_space<vmem>>, %arg9: memref<1x64xf32, #tpu.memory_space<vmem>>, %arg10: memref<192x32xbf16, #tpu.memory_space<vmem>>, %arg11: memref<1x32xf32, #tpu.memory_space<vmem>>, %arg12: memref<2x1x16x32xf32, #tpu.memory_space<vmem>>) attributes {dimension_semantics = [#tpu.dimension_semantics<parallel>], iteration_bounds = array<i64: 2>, scalar_prefetch = 0 : i64, scratch_operands = 0 : i64, tpu.core_type = #tpu.core_type<tc>, window_params = [{transform_indices = @transform_0, window_bounds = array<i64: 1, 16, 1>}, {transform_indices = @transform_1, window_bounds = array<i64: 2, 1, 16, 32>}, {pipeline_mode = #tpu.pipeline_mode<synchronous>, transform_indices = @transform_2, window_bounds = array<i64: 16, 16>}, {pipeline_mode = #tpu.pipeline_mode<synchronous>, transform_indices = @transform_3, window_bounds = array<i64: 99, 64>}, {pipeline_mode = #tpu.pipeline_mode<synchronous>, transform_indices = @transform_4, window_bounds = array<i64: 1, 64>}, {pipeline_mode = #tpu.pipeline_mode<synchronous>, transform_indices = @transform_5, window_bounds = array<i64: 99, 32>}, {pipeline_mode = #tpu.pipeline_mode<synchronous>, transform_indices = @transform_6, window_bounds = array<i64: 1, 32>}, {pipeline_mode = #tpu.pipeline_mode<synchronous>, transform_indices = @transform_7, window_bounds = array<i64: 192, 64>}, {pipeline_mode = #tpu.pipeline_mode<synchronous>, transform_indices = @transform_8, window_bounds = array<i64: 1, 64>}, {pipeline_mode = #tpu.pipeline_mode<synchronous>, transform_indices = @transform_9, window_bounds = array<i64: 192, 32>}, {pipeline_mode = #tpu.pipeline_mode<synchronous>, transform_indices = @transform_10, window_bounds = array<i64: 1, 32>}, {transform_indices = @transform_11, window_bounds = array<i64: 2, 1, 16, 32>}]} {
    %c0 = arith.constant 0 : index
    %c0_0 = arith.constant 0 : index
    %0 = vector.load %arg3[%c0, %c0_0] : memref<16x16xbf16, #tpu.memory_space<vmem>>, vector<16x16xbf16>
    %c0_1 = arith.constant 0 : index
    %c0_2 = arith.constant 0 : index
    %c0_3 = arith.constant 0 : index
    %1 = vector.load %arg1[%c0_1, %c0_2, %c0_3] : memref<1x16x1xf32, #tpu.memory_space<vmem>>, vector<1x16x1xf32>
    %2 = vector.shape_cast %1 : vector<1x16x1xf32> to vector<16x1xf32>
    %c0_4 = arith.constant 0 : index
    %c0_5 = arith.constant 0 : index
    %3 = vector.load %arg4[%c0_4, %c0_5] : memref<99x64xbf16, #tpu.memory_space<vmem>>, vector<99x64xbf16>
    %c0_6 = arith.constant 0 : index
    %c0_7 = arith.constant 0 : index
    %4 = vector.load %arg5[%c0_6, %c0_7] : memref<1x64xf32, #tpu.memory_space<vmem>>, vector<1x64xf32>
    %c0_8 = arith.constant 0 : index
    %c0_9 = arith.constant 0 : index
    %5 = vector.load %arg6[%c0_8, %c0_9] : memref<99x32xbf16, #tpu.memory_space<vmem>>, vector<99x32xbf16>
    %c0_10 = arith.constant 0 : index
    %c0_11 = arith.constant 0 : index
    %6 = vector.load %arg7[%c0_10, %c0_11] : memref<1x32xf32, #tpu.memory_space<vmem>>, vector<1x32xf32>
    %c0_12 = arith.constant 0 : index
    %c0_13 = arith.constant 0 : index
    %c0_14 = arith.constant 0 : index
    %c0_15 = arith.constant 0 : index
    %7 = vector.load %arg2[%c0_12, %c0_13, %c0_14, %c0_15] : memref<2x1x16x32xf32, #tpu.memory_space<vmem>>, vector<1x1x16x32xf32>
    %8 = vector.shape_cast %7 : vector<1x1x16x32xf32> to vector<16x32xf32>
    %9 = tpu.concatenate %2, %8 in 1 : vector<16x1xf32>, vector<16x32xf32> -> vector<16x33xf32>
    %10 = arith.truncf %9 : vector<16x33xf32> to vector<16x33xbf16>
    %cst = arith.constant dense<0.000000e+00> : vector<16x33xf32>
    %11 = tpu.matmul %0, %10, %cst {dimension_numbers = #tpu.dot_dimension_numbers<[1], [0], [0], [1], [0, 0, 1, 1], [], []>} : vector<16x16xbf16>, vector<16x33xbf16>, vector<16x33xf32> -> vector<16x33xf32>
    %12 = arith.truncf %11 : vector<16x33xf32> to vector<16x33xbf16>
    %cst_16 = arith.constant dense<0.000000e+00> : vector<16x33xf32>
    %13 = tpu.matmul %0, %12, %cst_16 {dimension_numbers = #tpu.dot_dimension_numbers<[1], [0], [0], [1], [0, 0, 1, 1], [], []>} : vector<16x16xbf16>, vector<16x33xbf16>, vector<16x33xf32> -> vector<16x33xf32>
    %cst_17 = arith.constant 2.000000e+00 : f32
    %14 = vector.broadcast %cst_17 : f32 to vector<16x33xf32>
    %15 = arith.mulf %14, %13 : vector<16x33xf32>
    %16 = arith.subf %15, %9 : vector<16x33xf32>
    %17 = tpu.concatenate %9, %11, %16 in 1 : vector<16x33xf32>, vector<16x33xf32>, vector<16x33xf32> -> vector<16x99xf32>
    %18 = arith.truncf %17 : vector<16x99xf32> to vector<16x99xbf16>
    %cst_18 = arith.constant dense<0.000000e+00> : vector<16x64xf32>
    %19 = tpu.matmul %18, %3, %cst_18 {dimension_numbers = #tpu.dot_dimension_numbers<[1], [0], [0], [1], [0, 0, 1, 1], [], []>} : vector<16x99xbf16>, vector<99x64xbf16>, vector<16x64xf32> -> vector<16x64xf32>
    %20 = vector.broadcast %4 : vector<1x64xf32> to vector<16x64xf32>
    %21 = arith.addf %19, %20 : vector<16x64xf32>
    %22 = arith.negf %21 : vector<16x64xf32>
    %23 = math.exp %22 : vector<16x64xf32>
    %cst_19 = arith.constant 1.000000e+00 : f32
    %24 = vector.broadcast %cst_19 : f32 to vector<16x64xf32>
    %25 = arith.addf %24, %23 : vector<16x64xf32>
    %26 = arith.divf %24, %25 : vector<16x64xf32>
    %27 = vector.extract_strided_slice %26 {offsets = [0, 0], sizes = [16, 32], strides = [1, 1]} : vector<16x64xf32> to vector<16x32xf32>
    %28 = vector.extract_strided_slice %26 {offsets = [0, 32], sizes = [16, 32], strides = [1, 1]} : vector<16x64xf32> to vector<16x32xf32>
    %29 = arith.mulf %27, %8 : vector<16x32xf32>
    %30 = arith.truncf %29 : vector<16x32xf32> to vector<16x32xbf16>
    %cst_20 = arith.constant dense<0.000000e+00> : vector<16x32xf32>
    %31 = tpu.matmul %0, %30, %cst_20 {dimension_numbers = #tpu.dot_dimension_numbers<[1], [0], [0], [1], [0, 0, 1, 1], [], []>} : vector<16x16xbf16>, vector<16x32xbf16>, vector<16x32xf32> -> vector<16x32xf32>
    %32 = arith.truncf %31 : vector<16x32xf32> to vector<16x32xbf16>
    %cst_21 = arith.constant dense<0.000000e+00> : vector<16x32xf32>
    %33 = tpu.matmul %0, %32, %cst_21 {dimension_numbers = #tpu.dot_dimension_numbers<[1], [0], [0], [1], [0, 0, 1, 1], [], []>} : vector<16x16xbf16>, vector<16x32xbf16>, vector<16x32xf32> -> vector<16x32xf32>
    %cst_22 = arith.constant 2.000000e+00 : f32
    %34 = vector.broadcast %cst_22 : f32 to vector<16x32xf32>
    %35 = arith.mulf %34, %33 : vector<16x32xf32>
    %36 = arith.subf %35, %29 : vector<16x32xf32>
    %37 = vector.extract_strided_slice %9 {offsets = [0, 0], sizes = [16, 1], strides = [1, 1]} : vector<16x33xf32> to vector<16x1xf32>
    %38 = tpu.concatenate %37, %29 in 1 : vector<16x1xf32>, vector<16x32xf32> -> vector<16x33xf32>
    %39 = vector.extract_strided_slice %11 {offsets = [0, 0], sizes = [16, 1], strides = [1, 1]} : vector<16x33xf32> to vector<16x1xf32>
    %40 = tpu.concatenate %39, %31 in 1 : vector<16x1xf32>, vector<16x32xf32> -> vector<16x33xf32>
    %41 = vector.extract_strided_slice %16 {offsets = [0, 0], sizes = [16, 1], strides = [1, 1]} : vector<16x33xf32> to vector<16x1xf32>
    %42 = tpu.concatenate %41, %36 in 1 : vector<16x1xf32>, vector<16x32xf32> -> vector<16x33xf32>
    %43 = tpu.concatenate %38, %40, %42 in 1 : vector<16x33xf32>, vector<16x33xf32>, vector<16x33xf32> -> vector<16x99xf32>
    %44 = arith.truncf %43 : vector<16x99xf32> to vector<16x99xbf16>
    %cst_23 = arith.constant dense<0.000000e+00> : vector<16x32xf32>
    %45 = tpu.matmul %44, %5, %cst_23 {dimension_numbers = #tpu.dot_dimension_numbers<[1], [0], [0], [1], [0, 0, 1, 1], [], []>} : vector<16x99xbf16>, vector<99x32xbf16>, vector<16x32xf32> -> vector<16x32xf32>
    %46 = vector.broadcast %6 : vector<1x32xf32> to vector<16x32xf32>
    %47 = arith.addf %45, %46 : vector<16x32xf32>
    %48 = math.tanh %47 : vector<16x32xf32>
    %49 = arith.mulf %28, %8 : vector<16x32xf32>
    %cst_24 = arith.constant 1.000000e+00 : f32
    %50 = vector.broadcast %cst_24 : f32 to vector<16x32xf32>
    %51 = arith.subf %50, %28 : vector<16x32xf32>
    %52 = arith.mulf %51, %48 : vector<16x32xf32>
    %53 = arith.addf %49, %52 : vector<16x32xf32>
    %c0_25 = arith.constant 0 : index
    %c0_26 = arith.constant 0 : index
    %c0_27 = arith.constant 0 : index
    %c0_28 = arith.constant 0 : index
    %54 = vector.load %arg12[%c0_25, %c0_26, %c0_27, %c0_28] : memref<2x1x16x32xf32, #tpu.memory_space<vmem>>, vector<1x1x16x32xf32>
    %55 = vector.shape_cast %54 : vector<1x1x16x32xf32> to vector<16x32xf32>
    %56 = vector.shape_cast %53 : vector<16x32xf32> to vector<1x1x16x32xf32>
    tpu.vector_store %arg12[%c0_25, %c0_26, %c0_27, %c0_28], %56 {strides = array<i32>} : memref<2x1x16x32xf32, #tpu.memory_space<vmem>>, vector<1x1x16x32xf32>,
    %c0_29 = arith.constant 0 : index
    %c0_30 = arith.constant 0 : index
    %57 = vector.load %arg8[%c0_29, %c0_30] : memref<192x64xbf16, #tpu.memory_space<vmem>>, vector<192x64xbf16>
    %c0_31 = arith.constant 0 : index
    %c0_32 = arith.constant 0 : index
    %58 = vector.load %arg9[%c0_31, %c0_32] : memref<1x64xf32, #tpu.memory_space<vmem>>, vector<1x64xf32>
    %c0_33 = arith.constant 0 : index
    %c0_34 = arith.constant 0 : index
    %59 = vector.load %arg10[%c0_33, %c0_34] : memref<192x32xbf16, #tpu.memory_space<vmem>>, vector<192x32xbf16>
    %c0_35 = arith.constant 0 : index
    %c0_36 = arith.constant 0 : index
    %60 = vector.load %arg11[%c0_35, %c0_36] : memref<1x32xf32, #tpu.memory_space<vmem>>, vector<1x32xf32>
    %c1 = arith.constant 1 : index
    %c0_37 = arith.constant 0 : index
    %c0_38 = arith.constant 0 : index
    %c0_39 = arith.constant 0 : index
    %61 = vector.load %arg2[%c1, %c0_37, %c0_38, %c0_39] : memref<2x1x16x32xf32, #tpu.memory_space<vmem>>, vector<1x1x16x32xf32>
    %62 = vector.shape_cast %61 : vector<1x1x16x32xf32> to vector<16x32xf32>
    %63 = tpu.concatenate %53, %62 in 1 : vector<16x32xf32>, vector<16x32xf32> -> vector<16x64xf32>
    %64 = arith.truncf %63 : vector<16x64xf32> to vector<16x64xbf16>
    %cst_40 = arith.constant dense<0.000000e+00> : vector<16x64xf32>
    %65 = tpu.matmul %0, %64, %cst_40 {dimension_numbers = #tpu.dot_dimension_numbers<[1], [0], [0], [1], [0, 0, 1, 1], [], []>} : vector<16x16xbf16>, vector<16x64xbf16>, vector<16x64xf32> -> vector<16x64xf32>
    %66 = arith.truncf %65 : vector<16x64xf32> to vector<16x64xbf16>
    %cst_41 = arith.constant dense<0.000000e+00> : vector<16x64xf32>
    %67 = tpu.matmul %0, %66, %cst_41 {dimension_numbers = #tpu.dot_dimension_numbers<[1], [0], [0], [1], [0, 0, 1, 1], [], []>} : vector<16x16xbf16>, vector<16x64xbf16>, vector<16x64xf32> -> vector<16x64xf32>
    %cst_42 = arith.constant 2.000000e+00 : f32
    %68 = vector.broadcast %cst_42 : f32 to vector<16x64xf32>
    %69 = arith.mulf %68, %67 : vector<16x64xf32>
    %70 = arith.subf %69, %63 : vector<16x64xf32>
    %71 = tpu.concatenate %63, %65, %70 in 1 : vector<16x64xf32>, vector<16x64xf32>, vector<16x64xf32> -> vector<16x192xf32>
    %72 = arith.truncf %71 : vector<16x192xf32> to vector<16x192xbf16>
    %cst_43 = arith.constant dense<0.000000e+00> : vector<16x64xf32>
    %73 = tpu.matmul %72, %57, %cst_43 {dimension_numbers = #tpu.dot_dimension_numbers<[1], [0], [0], [1], [0, 0, 1, 1], [], []>} : vector<16x192xbf16>, vector<192x64xbf16>, vector<16x64xf32> -> vector<16x64xf32>
    %74 = vector.broadcast %58 : vector<1x64xf32> to vector<16x64xf32>
    %75 = arith.addf %73, %74 : vector<16x64xf32>
    %76 = arith.negf %75 : vector<16x64xf32>
    %77 = math.exp %76 : vector<16x64xf32>
    %cst_44 = arith.constant 1.000000e+00 : f32
    %78 = vector.broadcast %cst_44 : f32 to vector<16x64xf32>
    %79 = arith.addf %78, %77 : vector<16x64xf32>
    %80 = arith.divf %78, %79 : vector<16x64xf32>
    %81 = vector.extract_strided_slice %80 {offsets = [0, 0], sizes = [16, 32], strides = [1, 1]} : vector<16x64xf32> to vector<16x32xf32>
    %82 = vector.extract_strided_slice %80 {offsets = [0, 32], sizes = [16, 32], strides = [1, 1]} : vector<16x64xf32> to vector<16x32xf32>
    %83 = arith.mulf %81, %62 : vector<16x32xf32>
    %84 = arith.truncf %83 : vector<16x32xf32> to vector<16x32xbf16>
    %cst_45 = arith.constant dense<0.000000e+00> : vector<16x32xf32>
    %85 = tpu.matmul %0, %84, %cst_45 {dimension_numbers = #tpu.dot_dimension_numbers<[1], [0], [0], [1], [0, 0, 1, 1], [], []>} : vector<16x16xbf16>, vector<16x32xbf16>, vector<16x32xf32> -> vector<16x32xf32>
    %86 = arith.truncf %85 : vector<16x32xf32> to vector<16x32xbf16>
    %cst_46 = arith.constant dense<0.000000e+00> : vector<16x32xf32>
    %87 = tpu.matmul %0, %86, %cst_46 {dimension_numbers = #tpu.dot_dimension_numbers<[1], [0], [0], [1], [0, 0, 1, 1], [], []>} : vector<16x16xbf16>, vector<16x32xbf16>, vector<16x32xf32> -> vector<16x32xf32>
    %cst_47 = arith.constant 2.000000e+00 : f32
    %88 = vector.broadcast %cst_47 : f32 to vector<16x32xf32>
    %89 = arith.mulf %88, %87 : vector<16x32xf32>
    %90 = arith.subf %89, %83 : vector<16x32xf32>
    %91 = vector.extract_strided_slice %63 {offsets = [0, 0], sizes = [16, 32], strides = [1, 1]} : vector<16x64xf32> to vector<16x32xf32>
    %92 = tpu.concatenate %91, %83 in 1 : vector<16x32xf32>, vector<16x32xf32> -> vector<16x64xf32>
    %93 = vector.extract_strided_slice %65 {offsets = [0, 0], sizes = [16, 32], strides = [1, 1]} : vector<16x64xf32> to vector<16x32xf32>
    %94 = tpu.concatenate %93, %85 in 1 : vector<16x32xf32>, vector<16x32xf32> -> vector<16x64xf32>
    %95 = vector.extract_strided_slice %70 {offsets = [0, 0], sizes = [16, 32], strides = [1, 1]} : vector<16x64xf32> to vector<16x32xf32>
    %96 = tpu.concatenate %95, %90 in 1 : vector<16x32xf32>, vector<16x32xf32> -> vector<16x64xf32>
    %97 = tpu.concatenate %92, %94, %96 in 1 : vector<16x64xf32>, vector<16x64xf32>, vector<16x64xf32> -> vector<16x192xf32>
    %98 = arith.truncf %97 : vector<16x192xf32> to vector<16x192xbf16>
    %cst_48 = arith.constant dense<0.000000e+00> : vector<16x32xf32>
    %99 = tpu.matmul %98, %59, %cst_48 {dimension_numbers = #tpu.dot_dimension_numbers<[1], [0], [0], [1], [0, 0, 1, 1], [], []>} : vector<16x192xbf16>, vector<192x32xbf16>, vector<16x32xf32> -> vector<16x32xf32>
    %100 = vector.broadcast %60 : vector<1x32xf32> to vector<16x32xf32>
    %101 = arith.addf %99, %100 : vector<16x32xf32>
    %102 = math.tanh %101 : vector<16x32xf32>
    %103 = arith.mulf %82, %62 : vector<16x32xf32>
    %cst_49 = arith.constant 1.000000e+00 : f32
    %104 = vector.broadcast %cst_49 : f32 to vector<16x32xf32>
    %105 = arith.subf %104, %82 : vector<16x32xf32>
    %106 = arith.mulf %105, %102 : vector<16x32xf32>
    %107 = arith.addf %103, %106 : vector<16x32xf32>
    %c1_50 = arith.constant 1 : index
    %c0_51 = arith.constant 0 : index
    %c0_52 = arith.constant 0 : index
    %c0_53 = arith.constant 0 : index
    %108 = vector.load %arg12[%c1_50, %c0_51, %c0_52, %c0_53] : memref<2x1x16x32xf32, #tpu.memory_space<vmem>>, vector<1x1x16x32xf32>
    %109 = vector.shape_cast %108 : vector<1x1x16x32xf32> to vector<16x32xf32>
    %110 = vector.shape_cast %107 : vector<16x32xf32> to vector<1x1x16x32xf32>
    tpu.vector_store %arg12[%c1_50, %c0_51, %c0_52, %c0_53], %110 {strides = array<i32>} : memref<2x1x16x32xf32, #tpu.memory_space<vmem>>, vector<1x1x16x32xf32>,
    return
  }
  func.func @transform_0(%arg0: i32) -> (i32, i32, i32) {
    %c0_i32 = arith.constant 0 : i32
    %c0_i32_0 = arith.constant 0 : i32
    %c0_i32_1 = arith.constant 0 : i32
    return %arg0, %c0_i32, %c0_i32_0 : i32, i32, i32
  }
  func.func @transform_1(%arg0: i32) -> (i32, i32, i32, i32) {
    %c0_i32 = arith.constant 0 : i32
    %c0_i32_0 = arith.constant 0 : i32
    %c0_i32_1 = arith.constant 0 : i32
    %c0_i32_2 = arith.constant 0 : i32
    return %c0_i32, %arg0, %c0_i32_0, %c0_i32_1 : i32, i32, i32, i32
  }
  func.func @transform_2(%arg0: i32) -> (i32, i32) {
    %c0_i32 = arith.constant 0 : i32
    %c0_i32_0 = arith.constant 0 : i32
    %c0_i32_1 = arith.constant 0 : i32
    return %c0_i32, %c0_i32_0 : i32, i32
  }
  func.func @transform_3(%arg0: i32) -> (i32, i32) {
    %c0_i32 = arith.constant 0 : i32
    %c0_i32_0 = arith.constant 0 : i32
    %c0_i32_1 = arith.constant 0 : i32
    return %c0_i32, %c0_i32_0 : i32, i32
  }
  func.func @transform_4(%arg0: i32) -> (i32, i32) {
    %c0_i32 = arith.constant 0 : i32
    %c0_i32_0 = arith.constant 0 : i32
    %c0_i32_1 = arith.constant 0 : i32
    return %c0_i32, %c0_i32_0 : i32, i32
  }
  func.func @transform_5(%arg0: i32) -> (i32, i32) {
    %c0_i32 = arith.constant 0 : i32
    %c0_i32_0 = arith.constant 0 : i32
    %c0_i32_1 = arith.constant 0 : i32
    return %c0_i32, %c0_i32_0 : i32, i32
  }
  func.func @transform_6(%arg0: i32) -> (i32, i32) {
    %c0_i32 = arith.constant 0 : i32
    %c0_i32_0 = arith.constant 0 : i32
    %c0_i32_1 = arith.constant 0 : i32
    return %c0_i32, %c0_i32_0 : i32, i32
  }
  func.func @transform_7(%arg0: i32) -> (i32, i32) {
    %c0_i32 = arith.constant 0 : i32
    %c0_i32_0 = arith.constant 0 : i32
    %c0_i32_1 = arith.constant 0 : i32
    return %c0_i32, %c0_i32_0 : i32, i32
  }
  func.func @transform_8(%arg0: i32) -> (i32, i32) {
    %c0_i32 = arith.constant 0 : i32
    %c0_i32_0 = arith.constant 0 : i32
    %c0_i32_1 = arith.constant 0 : i32
    return %c0_i32, %c0_i32_0 : i32, i32
  }
  func.func @transform_9(%arg0: i32) -> (i32, i32) {
    %c0_i32 = arith.constant 0 : i32
    %c0_i32_0 = arith.constant 0 : i32
    %c0_i32_1 = arith.constant 0 : i32
    return %c0_i32, %c0_i32_0 : i32, i32
  }
  func.func @transform_10(%arg0: i32) -> (i32, i32) {
    %c0_i32 = arith.constant 0 : i32
    %c0_i32_0 = arith.constant 0 : i32
    %c0_i32_1 = arith.constant 0 : i32
    return %c0_i32, %c0_i32_0 : i32, i32
  }
  func.func @transform_11(%arg0: i32) -> (i32, i32, i32, i32) {
    %c0_i32 = arith.constant 0 : i32
    %c0_i32_0 = arith.constant 0 : i32
    %c0_i32_1 = arith.constant 0 : i32
    %c0_i32_2 = arith.constant 0 : i32
    return %c0_i32, %arg0, %c0_i32_0, %c0_i32_1 : i32, i32, i32, i32
  }
}

</mosaic_0001>

<bundles_post_ra>
// kernel: tpu_custom_call.1
= control target key start
LH: loop header
LB: loop body
LE: loop exit
PB: predicated region body
PF: predicated region fallthrough
CT: control target
= control target key end

     0   :  { %s2705_s0 = inlined_call_operand.vmem [shape: f32[2,16,1], index: 0, kind: input, shape index: {}]   ;;  %s2706_s1 = inlined_call_operand.vmem [shape: f32[2,2,16,32], index: 1, kind: input, shape index: {}]   ;;  %s2707_s2 = inlined_call_operand.vmem [shape: bf16[16,16], index: 2, kind: input, shape index: {}]   ;;  %s2708_s3 = inlined_call_operand.vmem [shape: bf16[99,64], index: 3, kind: input, shape index: {}]   ;;  %s2709_s4 = inlined_call_operand.vmem [shape: f32[1,64], index: 4, kind: input, shape index: {}]   ;;  %s2710_s5 = inlined_call_operand.vmem [shape: bf16[99,32], index: 5, kind: input, shape index: {}]   ;;  %s2711_s6 = inlined_call_operand.vmem [shape: f32[1,32], index: 6, kind: input, shape index: {}]   ;;  %s2712_s7 = inlined_call_operand.vmem [shape: bf16[192,64], index: 7, kind: input, shape index: {}]   ;;  %s2713_s8 = inlined_call_operand.vmem [shape: f32[1,64], index: 8, kind: input, shape index: {}]   ;;  %s2714_s9 = inlined_call_operand.vmem [shape: bf16[192,32], index: 9, kind: input, shape index: {}]   ;;  %s2715_s10 = inlined_call_operand.vmem [shape: f32[1,32], index: 10, kind: input, shape index: {}]   ;;  %s2716_s11 = inlined_call_operand.hbm [shape: f32[2,2,16,32], index: 11, kind: output, shape index: {}]  }
   0x1   :  { %2721 = sst [smem:[#allocation8_spill]] %s2705_s0 }
   0x2   :  { %16 = vsyncpa [#allocation4], 0 }
   0x3   :  { %18 = vsyncpa [#allocation4 + $0x1], 0  ;;  %s2190_s17 = smov 0   ;;  %s2192_s18 = smov 0  }
   0x4   :  { %s2194_s19 = smov 0   ;;  %s2196_s20 = smov 0  }
   0x5 LB: > { %s2211_s21 = sadd.s32 4294967295, %s2111_s20   ;;  %s1694_s22 = sadd.s32 4294967294, %s2111_s20   ;;  %s2111_s20 = sphi %s2196_s20, %s2731_s20   ;;  %s2107_s19 = sphi %s2194_s19, %s2730_s19   ;;  %s2103_s18 = sphi %s2192_s18, %s2729_s18   ;;  %s2099_s17 = sphi %s2190_s17, %s2728_s17  }
   0x6   : > { %s2215_s23 = sadd.s32 1, %s2111_s20   ;;  %s57_s24 = sadd.s32 1, %s2107_s19 }
   0x7   : > { %s54_s25 = ssub.s32 %s2111_s20, %s2215_s23  ;;  %p64_p0 = scmp.ne.s32.totalorder %s2107_s19, %s2103_s18 }
   0x8   : > { %p55_p1 = scmp.eq.s32.totalorder %s54_s25, 0  ;;  %p65_p2 = scmp.eq.s32.totalorder %s2111_s20, 0 }
   0x9   : > { %p283_p3 = scmp.eq.s32.totalorder %s2211_s21, 1  ;;  %p288_p4 = scmp.ne.s32.totalorder %s2103_s18, %s2099_s17 }
   0xa   : > { %s2227_s26 = scalar_select %p55_p1, %s2107_s19, %s57_s24  }
   0xb   : > { %p66_p5 = por %p65_p2, %p64_p0  ;;  %p2229_p6 = por %p283_p3, %p64_p0 }
   0xc   : > { %p289_p7 = scmp.eq.s32.totalorder %s1694_s22, 1  ;;  %p1696_p9 = scmp.ge.s32.totalorder %s2111_s20, 2 }
   0xe   : > { %p2233_p8 = por %p289_p7, %p288_p4  ;;  %332 = sbr.rel (%p1696_p9) target bundleno = 25 (0x19), region = 52 }
  0x13   : > { %343 = sbr.rel (!%p66_p5) target bundleno = 25 (0x19), region = 60  ;;  %s345_s29 = sand.u32 (%p66_p5), 1, %s2107_s19  }
  0x14   : > { %s1773_s30 = sshll.u32 (%p66_p5), %s2111_s20, 4  ;;  %s1697_s12 = sshll.u32 (%p66_p5), %s345_s29, 5 }
  0x15   : > { %s350_s15 = scalar_lea.vmem (%p66_p5), %s2706_s1, %s1773_s30  ;;  %s347_s16 = scalar_lea.vmem (%p66_p5), [#allocation2], %s1697_s12 }
  0x16   : > { %v385_v0 = vld [vmem:[%s350_s15] sm:$0xff] (%p66_p5)  ;;  %v387_v1 = vld [vmem:[%s350_s15 + $0x8] sm:$0xff] (%p66_p5) }
  0x17   : > { %v389_v2 = vld [vmem:[%s350_s15 + $0x20] sm:$0xff] (%p66_p5)  ;;  %386 = vst [vmem:[%s347_s16] sm:$0xff] (%p66_p5), %v385_v0  ;;  %388 = vst [vmem:[%s347_s16 + $0x8] sm:$0xff] (%p66_p5), %v387_v1  ;;  %v391_v3 = vld [vmem:[%s350_s15 + $0x28] sm:$0xff] (%p66_p5) }
  0x18   : > { %390 = vst [vmem:[%s347_s16 + $0x10] sm:$0xff] %v389_v2  ;;  %392 = vst [vmem:[%s347_s16 + $0x18] sm:$0xff] %v391_v3 }
  0x19 PF: > { %p1700_p10 = scmp.ge.s32.totalorder %s2111_s20, 1  ;;  %p397_p11 = scmp.lt.s32.totalorder %s2111_s20, 3 }
  0x1b   : > { %p398_p12 = pnand %p1700_p10, %p397_p11 }
  0x1c   : > { %s2717_s22 = sand.u32 (!%p398_p12), 1, %s2103_s18   ;;  %s2115_s29 = smov (!%p398_p12), 1  }
  0x1d   : > { %401 = sbr.rel (%p398_p12) target bundleno = 3654 (0xe46), region = 98  ;;  %s2250_s24 = sshll.u32 (!%p398_p12), %s2717_s22, 5 }
  0x1e   : > { %s2259_s25 = scalar_lea.vmem (!%p398_p12), [#allocation2], %s2250_s24  ;;  %p448_p13 = scmp.lt.s32.totalorder (!%p398_p12), %s2211_s21, 1 }
  0x1f   : > { %s2724_s0 = sld [smem:[#allocation8_spill]] (!%p398_p12)  ;;  %s2725_s14 = smov (!%p398_p12), 33  }
  0x20   : > { %s2119_s22 = smov (!%p398_p12), 32  }
  0x22   : > { %v2113_v4 = vmov 0.0   ;;  %vm2114_vm0 = vmmov 0   ;;  %v2262_v5 = vld [vmem:[%s2259_s25] sm:$0xff]  ;;  %v2267_v6 = vld [vmem:[%s2259_s25 + $0x8] sm:$0xff]  ;;  %s449_s30 = scalar_select %p448_p13, %s2211_s21, 1  ;;  %vm496_vm1 = vcmask 7168  }
  0x23   : > { %1808 = vmatprep.subr.bf16.mxu0 %v2113_v4  ;;  %1810 = vmatprep.mubr.msk.bf16.mxu0 %vm2114_vm0, %v2113_v4  ;;  %v2287_v14 = vld [vmem:[%s2707_s2] sm:$0xff]   ;;  %vm505_vm2 = vcmask 130048   ;;  %v2015_v21 = vld [vmem:[%s2708_s3 + $0x30] ss:$0 sps:$4 sm:$0x33]   ;;  %vm668_vm3 = vcmask 1040384  }
  0x24   : > { %1838 = vmatprep.subr.bf16.mxu1 %v2113_v4  ;;  %1840 = vmatprep.mubr.msk.bf16.mxu1 %vm2114_vm0, %v2113_v4  ;;  %s1774_s12 = sshll.u32 %s449_s30, 4  ;;  %vm669_vm4 = vcmask 1041408   ;;  %v2117_v22 = vmov 65535   ;;  %v2016_v26 = vld [vmem:[%s2708_s3 + $0x28] sm:$0xff]   ;;  %v2017_v27 = vld [vmem:[%s2708_s3 + $0x20] sm:$0xff]   ;;  %v2018_v28 = vld [vmem:[%s2708_s3 + $0x18] sm:$0xff]  }
  0x25   : > { %490 = vrot.lane.b32.xlu0 %v2262_v5, %s2115_s29  ;;  %s452_s15 = scalar_lea.vmem %s2724_s0, %s1774_s12  ;;  %s2718_s12 = smov 33   ;;  %v670_v23 = vsel %vm668_vm3, 4294967295, %v2117_v22  ;;  %v2019_v29 = vld [vmem:[%s2708_s3 + $0x10] sm:$0xff]   ;;  %v2020_v30 = vld [vmem:[%s2708_s3 + $0x8] sm:$0xff]   ;;  %v2021_v31 = vld [vmem:[%s2708_s3] sm:$0xff]   ;;  %vm612_vm5 = vcmask 269312  }
  0x26   : > { %v456_v8 = vld [vmem:[%s452_s15] sm:$0xff]  ;;  %v457_v9 = vld [vmem:[%s452_s15 + $0x8] sm:$0xff]  ;;  %v2311_v24 = vsel %vm669_vm4, %v670_v23, 0  ;;  %vm615_vm6 = vcmask 539648   ;;  %vm664_vm7 = vcmask 809984   ;;  %vm993_vm8 = vcmask 261120  }
  0x27   : > { %v673_v25 = vand.u32 %v2015_v21, %v2311_v24  ;;  %v1708_v52 = vld [vmem:[%s2709_s4] ss:$0 sm:$0xff]  ;;  %s2457_s15 = scalar_lea.vmem [#allocation3], %s2250_s24  ;;  %s2121_s24 = smov 64   ;;  %vm1155_vm9 = vcmask 523264  }
  0x29   : > { %492 = vrot.lane.b32.xlu0 %v2267_v6, %s2115_s29 }
  0x97   : > { %v491_v7 = vpop.permute.xlu0 %490 }
  0x98   : > { %v2277_v11 = vsel %vm496_vm1, %v456_v8, %v491_v7 }
  0x9b   : > { %v493_v10 = vpop.permute.xlu0 %492 }
  0x9c   : > { %v2280_v12 = vsel %vm496_vm1, %v457_v9, %v493_v10 }
  0x9d   : > { %v499_v13 = vpack.c.bf16 %v2280_v12, %v2277_v11 }
  0x9f   : > { %1809 = vmatpush3.bf16.msra.mxu0 %v499_v13 }
  0xa0   : > { %1814 = vmatprep.subr.bf16.mxu0 %v2113_v4 }
  0xa2   : > { %1811 = vmatmul.mubr.msk.bf16.vlgmr.msra.gmra.mxu0 %vm505_vm2, %v2287_v14 }
  0xa3   : > { %1816 = vmatprep.mubr.msk.bf16.mxu0 %vm2114_vm0, %v2113_v4 }
 0x162   : > { %v2294_v15 = vpop.f32.mrf.mxu0 }
 0x164   : > { %v1812_v16 = vpop.f32.mrf.mxu0 }
 0x166   : > { %v2296_v17 = vpop.f32.mrf.mxu0 }
 0x167   : > { %v550_v18 = vpack.c.bf16 %v2296_v17, %v2294_v15  ;;  %v1954_v19 = vpack.i.bf16 %v2296_v17, %v2294_v15 }
 0x168   : > { %v1813_v20 = vpop.f32.mrf.mxu0 }
 0x169   : > { %1955 = vrot.lane.b32.xlu1 %v1954_v19, %s2718_s12  ;;  %1815 = vmatpush3.bf16.msra.mxu0 %v550_v18  ;;  %s2118_s12 = smov 66  }
 0x16a   : > { %1820 = vmatprep.subr.bf16.mxu0 %v2113_v4 }
 0x16c   : > { %1817 = vmatmul.mubr.msk.bf16.vlgmr.msra.gmra.mxu0 %vm505_vm2, %v2287_v14 }
 0x16d   : > { %1834 = vmatprep.mubr.msk.bf16.mxu0 %vm2114_vm0, %v2113_v4  ;;  %1821 = vmatpush3.bf16.msra.mxu0 %v673_v25 }
 0x16e   : > { %1822 = vmatprep.subr.bf16.mxu0 %v2113_v4 }
 0x171   : > { %1823 = vmatpush3.bf16.msra.mxu0 %v2016_v26 }
 0x172   : > { %1824 = vmatprep.subr.bf16.mxu0 %v2113_v4 }
 0x175   : > { %1825 = vmatpush3.bf16.msra.mxu0 %v2017_v27 }
 0x176   : > { %1826 = vmatprep.subr.bf16.mxu0 %v2113_v4 }
 0x179   : > { %1827 = vmatpush3.bf16.msra.mxu0 %v2018_v28 }
 0x17a   : > { %1828 = vmatprep.subr.bf16.mxu0 %v2113_v4 }
 0x17d   : > { %1829 = vmatpush3.bf16.msra.mxu0 %v2019_v29 }
 0x17e   : > { %1830 = vmatprep.subr.bf16.mxu0 %v2113_v4 }
 0x181   : > { %1831 = vmatpush3.bf16.msra.mxu0 %v2020_v30 }
 0x182   : > { %1832 = vmatprep.subr.bf16.mxu0 %v2113_v4 }
 0x185   : > { %1833 = vmatpush3.bf16.msra.mxu0 %v2021_v31 }
 0x186   : > { %1868 = vmatprep.subr.bf16.mxu0 %v2113_v4 }
 0x1db   : > { %v1956_v41 = vpop.permute.xlu1 %1955 }
 0x1dc   : > { %v1958_v42 = vunpack.i.h.bf16 %v1956_v41  ;;  %v1957_v43 = vunpack.i.l.bf16 %v1956_v41 }
 0x1de   : > { %v614_v47 = vsel %vm612_vm5, %v2280_v12, %v1958_v42  ;;  %v613_v48 = vsel %vm612_vm5, %v2277_v11, %v1957_v43  ;;  %v2027_v42 = vld [vmem:[%s2710_s5 + $0x8] sm:$0xff]  }
 0x22c   : > { %v585_v32 = vpop.f32.mrf.mxu0 }
 0x22d   : > { %v592_v34 = vmul.f32 2.0, %v585_v32 }
 0x22e   : > { %v1818_v33 = vpop.f32.mrf.mxu0 }
 0x22f   : > { %v2340_v38 = vsub.f32 %v592_v34, %v2277_v11  ;;  %v2022_v33 = vld [vmem:[%s2710_s5 + $0x30] ss:$0 sps:$4 sm:$0x33]  }
 0x230   : > { %v588_v35 = vpop.f32.mrf.mxu0 }
 0x231   : > { %v593_v36 = vmul.f32 2.0, %v588_v35  ;;  %v918_v35 = vand.u32 %v2022_v33, %v2311_v24  ;;  %v2026_v24 = vld [vmem:[%s2710_s5 + $0x10] sm:$0xff]  }
 0x232   : > { %v1819_v37 = vpop.f32.mrf.mxu0 }
 0x233   : > { %v2343_v39 = vsub.f32 %v593_v36, %v2280_v12 }
 0x235   : > { %v1959_v40 = vpack.i.bf16 %v2343_v39, %v2340_v38 }
 0x237   : > { %1960 = vrot.lane.b32.xlu1 %v1959_v40, %s2118_s12  ;;  %v2023_v40 = vld [vmem:[%s2710_s5 + $0x28] sm:$0xff]  }
 0x2a9   : > { %v1961_v44 = vpop.permute.xlu1 %1960 }
 0x2aa   : > { %v1963_v45 = vunpack.i.h.bf16 %v1961_v44  ;;  %v1962_v46 = vunpack.i.l.bf16 %v1961_v44 }
 0x2ac   : > { %v617_v49 = vsel %vm615_vm6, %v614_v47, %v1963_v45  ;;  %v616_v50 = vsel %vm615_vm6, %v613_v48, %v1962_v46 }
 0x2ad   : > { %v618_v51 = vpack.c.bf16 %v617_v49, %v616_v50 }
 0x2af   : > { %1835 = vmatmul.mubr.msk.bf16.vlgmr.msra.gmra.mxu0 %vm664_vm7, %v618_v51 }
 0x2b0   : > { %1870 = vmatprep.mubr.msk.bf16.mxu0 %vm2114_vm0, %v2113_v4 }
 0x36f   : > { %v709_v53 = vpop.f32.mrf.mxu0 }
 0x370   : > { %v710_v54 = vadd.f32 %v1708_v52, %v709_v53 }
 0x371   : > { %v1836_v55 = vpop.f32.mrf.mxu0 }
 0x372   : > { %v1717_v56 = vmul.f32 -1.442695, %v710_v54 }
 0x373   : > { %v712_v57 = vpop.f32.mrf.mxu0 }
 0x374   : > { %2053 = vpow2.f32 %v1717_v56  ;;  %v713_v58 = vadd.f32 %v1708_v52, %v712_v57 }
 0x375   : > { %v1837_v59 = vpop.f32.mrf.mxu0 }
 0x376   : > { %v1718_v60 = vmul.f32 -1.442695, %v713_v58 }
 0x378   : > { %2055 = vpow2.f32 %v1718_v60 }
 0x381   : > { %v2054_v61 = vpop.eup %2053 }
 0x382   : > { %v722_v62 = vadd.f32 1.0, %v2054_v61 }
 0x384   : > { %2057 = vrcp.f32 %v722_v62 }
 0x385   : > { %v2056_v63 = vpop.eup %2055 }
 0x386   : > { %v723_v0 = vadd.f32 1.0, %v2056_v63 }
 0x388   : > { %2059 = vrcp.f32 %v723_v0 }
 0x391   : > { %v2360_v1 = vpop.eup %2057 }
 0x392   : > { %v728_v3 = vmul.f32 %v2360_v1, %v2262_v5 }
 0x395   : > { %v2362_v2 = vpop.eup %2059 }
 0x396   : > { %v729_v7 = vmul.f32 %v2362_v2, %v2267_v6 }
 0x398   : > { %v730_v8 = vpack.c.bf16 %v729_v7, %v728_v3  ;;  %v1974_v20 = vpack.i.bf16 %v729_v7, %v728_v3 }
 0x39a   : > { %1839 = vmatpush3.bf16.msra.mxu1 %v730_v8 }
 0x39b   : > { %1844 = vmatprep.subr.bf16.mxu1 %v2113_v4 }
 0x39d   : > { %1841 = vmatmul.mubr.msk.bf16.vlgmr.msra.gmra.mxu1 %vm505_vm2, %v2287_v14 }
 0x39e   : > { %1846 = vmatprep.mubr.msk.bf16.mxu1 %vm2114_vm0, %v2113_v4 }
 0x45d   : > { %v765_v9 = vpop.f32.mrf.mxu1 }
 0x45f   : > { %v1842_v10 = vpop.f32.mrf.mxu1 }
 0x461   : > { %v768_v13 = vpop.f32.mrf.mxu1 }
 0x462   : > { %v1964_v16 = vpack.i.bf16 %v768_v13, %v765_v9  ;;  %v772_v18 = vpack.c.bf16 %v768_v13, %v765_v9  ;;  %v971_v13 = vsub.f32 1.0, %v2360_v1 }
 0x463   : > { %v1843_v19 = vpop.f32.mrf.mxu1 }
 0x464   : > { %1965 = vrot.lane.b32.xlu0 %v1964_v16, %s2115_s29  ;;  %1845 = vmatpush3.bf16.msra.mxu1 %v772_v18 }
 0x465   : > { %1850 = vmatprep.subr.bf16.mxu1 %v2113_v4 }
 0x467   : > { %1847 = vmatmul.mubr.msk.bf16.vlgmr.msra.gmra.mxu1 %vm505_vm2, %v2287_v14 }
 0x468   : > { %1975 = vrot.lane.b32.xlu0 %v1974_v20, %s2115_s29  ;;  %1864 = vmatprep.mubr.msk.bf16.mxu1 %vm2114_vm0, %v2113_v4 }
 0x469   : > { %1851 = vmatpush3.bf16.msra.mxu1 %v918_v35 }
 0x46a   : > { %1852 = vmatprep.subr.bf16.mxu1 %v2113_v4 }
 0x46d   : > { %1853 = vmatpush3.bf16.msra.mxu1 %v2023_v40 }
 0x46e   : > { %1854 = vmatprep.subr.bf16.mxu1 %v2113_v4 }
 0x4d6   : > { %v1966_v23 = vpop.permute.xlu0 %1965 }
 0x4d7   : > { %v1968_v28 = vunpack.i.h.bf16 %v1966_v23  ;;  %v1967_v29 = vunpack.i.l.bf16 %v1966_v23 }
 0x4d9   : > { %v836_v36 = vsel %vm496_vm1, %v2294_v15, %v1967_v29  ;;  %v837_v37 = vsel %vm496_vm1, %v2296_v17, %v1968_v28  ;;  %v2024_v15 = vld [vmem:[%s2710_s5 + $0x20] sm:$0xff]   ;;  %v2025_v17 = vld [vmem:[%s2710_s5 + $0x18] sm:$0xff]  }
 0x4da   : > { %v1979_v41 = vpack.i.bf16 %v837_v37, %v836_v36  ;;  %1855 = vmatpush3.bf16.msra.mxu1 %v2024_v15  ;;  %v1976_v49 = vpop.permute.xlu0 %1975 }
 0x4db   : > { %1856 = vmatprep.subr.bf16.mxu1 %v2113_v4  ;;  %v1978_v51 = vunpack.i.h.bf16 %v1976_v49  ;;  %v1977_v52 = vunpack.i.l.bf16 %v1976_v49  ;;  %v2038_v49 = vld [vmem:[%s2712_s7 + $0x50] sm:$0xff]  }
 0x4dd   : > { %v827_v56 = vsel %vm496_vm1, %v2280_v12, %v1978_v51  ;;  %v2040_v51 = vld [vmem:[%s2712_s7 + $0x40] sm:$0xff]  }
 0x4de   : > { %1857 = vmatpush3.bf16.msra.mxu1 %v2025_v17  ;;  %v2029_v17 = vld [vmem:[%s2712_s7 + $0x38] sm:$0xff]  }
 0x4df   : > { %1858 = vmatprep.subr.bf16.mxu1 %v2113_v4 }
 0x4e2   : > { %1859 = vmatpush3.bf16.msra.mxu1 %v2026_v24  ;;  %v2122_v24 = vmov 0  }
 0x4e3   : > { %1860 = vmatprep.subr.bf16.mxu1 %v2113_v4 }
 0x4e6   : > { %1861 = vmatpush3.bf16.msra.mxu1 %v2027_v42  ;;  %v2030_v42 = vld [vmem:[%s2712_s7 + $0x30] sm:$0xff]  }
 0x4e7   : > { %1862 = vmatprep.subr.bf16.mxu1 %v2113_v4 }
 0x527   : > { %v807_v21 = vpop.f32.mrf.mxu1 }
 0x528   : > { %v814_v25 = vmul.f32 2.0, %v807_v21 }
 0x529   : > { %v1848_v22 = vpop.f32.mrf.mxu1 }
 0x52a   : > { %v816_v31 = vsub.f32 %v814_v25, %v728_v3  ;;  %v972_v22 = vsub.f32 1.0, %v2362_v2 }
 0x52b   : > { %v810_v26 = vpop.f32.mrf.mxu1 }
 0x52c   : > { %v815_v27 = vmul.f32 2.0, %v810_v26 }
 0x52d   : > { %v1849_v30 = vpop.f32.mrf.mxu1 }
 0x52e   : > { %v817_v32 = vsub.f32 %v815_v27, %v729_v7  ;;  %v2446_v27 = vld [vmem:[%s2259_s25 + $0x10] sm:$0xff] }
 0x530   : > { %v1969_v34 = vpack.i.bf16 %v817_v32, %v816_v31 }
 0x532   : > { %1970 = vrot.lane.b32.xlu1 %v1969_v34, %s2115_s29 }
 0x536   : > { %1980 = vrot.lane.b32.xlu1 %v1979_v41, %s2725_s14  ;;  %s2719_s14 = smov 96  }
 0x53a   : > { %963 = vrot.lane.b32.xlu1 %v2262_v5, %s2119_s22  ;;  %v2028_v5 = vld [vmem:[%s2710_s5] sm:$0xff]  }
 0x53b   : > { %1863 = vmatpush3.bf16.msra.mxu1 %v2028_v5  ;;  %v2031_v5 = vld [vmem:[%s2712_s7 + $0x28] sm:$0xff]  }
 0x53c   : > { %1880 = vmatprep.subr.bf16.mxu1 %v2113_v4 }
 0x5a4   : > { %v1971_v43 = vpop.permute.xlu1 %1970 }
 0x5a5   : > { %v1973_v44 = vunpack.i.h.bf16 %v1971_v43  ;;  %v1972_v45 = vunpack.i.l.bf16 %v1971_v43  ;;  %v2032_v43 = vld [vmem:[%s2712_s7 + $0x20] sm:$0xff]  }
 0x5a7   : > { %v846_v46 = vsel %vm496_vm1, %v2340_v38, %v1972_v45  ;;  %v847_v47 = vsel %vm496_vm1, %v2343_v39, %v1973_v44  ;;  %v826_v38 = vsel %vm496_vm1, %v2277_v11, %v1977_v52  ;;  %v1721_v11 = vld [vmem:[%s2711_s6] ss:$0 sm:$0xff]  ;;  %v2033_v44 = vld [vmem:[%s2712_s7 + $0x18] sm:$0xff]   ;;  %v2034_v45 = vld [vmem:[%s2712_s7 + $0x10] sm:$0xff]  }
 0x5a8   : > { %v1984_v48 = vpack.i.bf16 %v847_v47, %v846_v46  ;;  %v1981_v50 = vpop.permute.xlu1 %1980  ;;  %v2035_v46 = vld [vmem:[%s2712_s7 + $0x8] sm:$0xff]   ;;  %v2036_v47 = vld [vmem:[%s2712_s7] sm:$0xff]  }
 0x5a9   : > { %v1983_v53 = vunpack.i.h.bf16 %v1981_v50  ;;  %v1982_v54 = vunpack.i.l.bf16 %v1981_v50  ;;  %v2039_v50 = vld [vmem:[%s2712_s7 + $0x48] sm:$0xff]  }
 0x5aa   : > { %1985 = vrot.lane.b32.xlu0 %v1984_v48, %s2118_s12  ;;  %v2037_v48 = vld [vmem:[%s2712_s7 + $0x58] sm:$0xff]  }
 0x5ab   : > { %v865_v58 = vsel %vm612_vm5, %v827_v56, %v1983_v53  ;;  %v864_v59 = vsel %vm612_vm5, %v826_v38, %v1982_v54 }
 0x5ac   : > { %v964_v10 = vpop.permute.xlu1 %963 }
 0x5ad   : > { %v969_v19 = vmul.f32 %v2360_v1, %v964_v10  ;;  %v2452_v1 = vld [vmem:[%s2259_s25 + $0x18] sm:$0xff] }
 0x5ae   : > { %965 = vrot.lane.b32.xlu0 %v2267_v6, %s2119_s22 }
 0x61c   : > { %v1986_v55 = vpop.permute.xlu0 %1985 }
 0x61d   : > { %v1988_v39 = vunpack.i.h.bf16 %v1986_v55  ;;  %v1987_v57 = vunpack.i.l.bf16 %v1986_v55 }
 0x61f   : > { %v867_v6 = vsel %vm615_vm6, %v865_v58, %v1988_v39  ;;  %v866_v60 = vsel %vm615_vm6, %v864_v59, %v1987_v57 }
 0x620   : > { %v868_v61 = vpack.c.bf16 %v867_v6, %v866_v60  ;;  %v966_v16 = vpop.permute.xlu0 %965 }
 0x621   : > { %v970_v25 = vmul.f32 %v2362_v2, %v966_v16 }
 0x622   : > { %1865 = vmatmul.mubr.msk.bf16.vlgmr.msra.gmra.mxu1 %vm664_vm7, %v868_v61 }
 0x623   : > { %1882 = vmatprep.mubr.msk.bf16.mxu1 %vm2114_vm0, %v2113_v4 }
 0x6e2   : > { %v954_v12 = vpop.f32.mrf.mxu1 }
 0x6e3   : > { %v955_v62 = vadd.f32 %v1721_v11, %v954_v12 }
 0x6e4   : > { %v1866_v63 = vpop.f32.mrf.mxu1 }
 0x6e5   : > { %2061 = vtanh.f32 %v955_v62  ;;  %v1734_v62 = vld [vmem:[%s2713_s8] ss:$0 sm:$0xff] }
 0x6e6   : > { %v957_v0 = vpop.f32.mrf.mxu1 }
 0x6e7   : > { %v958_v3 = vadd.f32 %v1721_v11, %v957_v0 }
 0x6e8   : > { %v1867_v7 = vpop.f32.mrf.mxu1 }
 0x6e9   : > { %2063 = vtanh.f32 %v958_v3 }
 0x6f2   : > { %v2062_v8 = vpop.eup %2061 }
 0x6f3   : > { %975 = vrot.lane.b32.xlu1 %v2062_v8, %s2119_s22 }
 0x6f6   : > { %v2064_v9 = vpop.eup %2063 }
 0x6f7   : > { %977 = vrot.lane.b32.xlu0 %v2064_v9, %s2119_s22 }
 0x765   : > { %v976_v18 = vpop.permute.xlu1 %975 }
 0x766   : > { %v981_v20 = vmul.f32 %v976_v18, %v971_v13 }
 0x768   : > { %v983_v21 = vadd.f32 %v981_v20, %v969_v19 }
 0x769   : > { %v978_v23 = vpop.permute.xlu0 %977 }
 0x76a   : > { %v982_v26 = vmul.f32 %v978_v23, %v972_v22  ;;  %987 = vrot.lane.b32.xlu1 %v983_v21, %s2719_s14 }
 0x76c   : > { %v984_v28 = vadd.f32 %v982_v26, %v970_v25 }
 0x76e   : > { %1051 = vrot.lane.b32.xlu1 %v2446_v27, %s2119_s22  ;;  %989 = vrot.lane.b32.xlu0 %v984_v28, %s2719_s14  ;;  %s2726_s14 = smov 96  }
 0x772   : > { %1053 = vrot.lane.b32.xlu0 %v2452_v1, %s2119_s22 }
 0x7dc   : > { %v988_v29 = vpop.permute.xlu1 %987 }
 0x7dd   : > { %994 = vst.msk [vmem:[%s2457_s15] sm:$0xff] %vm993_vm8, %v988_v29 }
 0x7e0   : > { %v990_v2 = vpop.permute.xlu0 %989  ;;  %v2463_v30 = vpop.permute.xlu1 %1051 }
 0x7e1   : > { %995 = vst.msk [vmem:[%s2457_s15 + $0x8] sm:$0xff] %vm993_vm8, %v990_v2  ;;  %v2469_v32 = vsel %vm993_vm8, %v988_v29, %v2463_v30 }
 0x7e4   : > { %v2465_v31 = vpop.permute.xlu0 %1053 }
 0x7e5   : > { %v2473_v33 = vsel %vm993_vm8, %v990_v2, %v2465_v31 }
 0x7e6   : > { %v1059_v34 = vpack.c.bf16 %v2473_v33, %v2469_v32 }
 0x7e8   : > { %1869 = vmatpush3.bf16.msra.mxu0 %v1059_v34 }
 0x7e9   : > { %1874 = vmatprep.subr.bf16.mxu0 %v2113_v4 }
 0x7eb   : > { %1871 = vmatmul.mubr.msk.bf16.vlgmr.msra.gmra.mxu0 %vm505_vm2, %v2287_v14 }
 0x7ec   : > { %1876 = vmatprep.mubr.msk.bf16.mxu0 %vm2114_vm0, %v2113_v4 }
 0x8ab   : > { %v2482_v35 = vpop.f32.mrf.mxu0 }
 0x8ad   : > { %v1872_v36 = vpop.f32.mrf.mxu0 }
 0x8af   : > { %v2484_v37 = vpop.f32.mrf.mxu0 }
 0x8b0   : > { %v1989_v40 = vpack.i.bf16 %v2484_v37, %v2482_v35  ;;  %v1101_v41 = vpack.c.bf16 %v2484_v37, %v2482_v35 }
 0x8b1   : > { %v1873_v15 = vpop.f32.mrf.mxu0 }
 0x8b2   : > { %1990 = vrot.lane.b32.xlu1 %v1989_v40, %s2121_s24  ;;  %1875 = vmatpush3.bf16.msra.mxu0 %v1101_v41  ;;  %v2041_v40 = vld [vmem:[%s2714_s9 + $0x38] sm:$0xff]  }
 0x8b3   : > { %1241 = vmatprep.subr.bf16.mxu0 %v2122_v24 }
 0x8b5   : > { %1877 = vmatmul.mubr.msk.bf16.vlgmr.msra.gmra.mxu0 %vm505_vm2, %v2287_v14 }
 0x8b6   : > { %1242 = vmatpush1.bf16.msra.mxu0 %v2029_v17 }
 0x8b7   : > { %1243 = vmatprep.subr.bf16.mxu0 %v2122_v24 }
 0x8ba   : > { %1244 = vmatpush1.bf16.msra.mxu0 %v2030_v42  ;;  %v2043_v42 = vld [vmem:[%s2714_s9 + $0x28] sm:$0xff]  }
 0x8bb   : > { %1245 = vmatprep.subr.bf16.mxu0 %v2122_v24 }
 0x8be   : > { %1246 = vmatpush1.bf16.msra.mxu0 %v2031_v5 }
 0x8bf   : > { %1247 = vmatprep.subr.bf16.mxu0 %v2122_v24 }
 0x8c2   : > { %1248 = vmatpush1.bf16.msra.mxu0 %v2032_v43 }
 0x8c3   : > { %1249 = vmatprep.subr.bf16.mxu0 %v2122_v24 }
 0x8c6   : > { %1250 = vmatpush1.bf16.msra.mxu0 %v2033_v44  ;;  %v2044_v44 = vld [vmem:[%s2714_s9 + $0x20] sm:$0xff]  }
 0x8c7   : > { %1251 = vmatprep.subr.bf16.mxu0 %v2122_v24 }
 0x8ca   : > { %1252 = vmatpush1.bf16.msra.mxu0 %v2034_v45  ;;  %v2047_v45 = vld [vmem:[%s2714_s9 + $0x8] sm:$0xff]  }
 0x8cb   : > { %1253 = vmatprep.subr.bf16.mxu0 %v2122_v24 }
 0x8ce   : > { %1254 = vmatpush1.bf16.msra.mxu0 %v2035_v46  ;;  %v2048_v46 = vld [vmem:[%s2714_s9] sm:$0xff]  }
 0x8cf   : > { %1255 = vmatprep.subr.bf16.mxu0 %v2122_v24 }
 0x8d2   : > { %1256 = vmatpush1.bf16.msra.mxu0 %v2036_v47  ;;  %v2049_v47 = vld [vmem:[%s2714_s9 + $0x58] sm:$0xff]  }
 0x8d3   : > { %1265 = vmatprep.subr.bf16.mxu0 %v2122_v24 }
 0x8d6   : > { %1266 = vmatpush2.bf16.msra.mxu0 %v2037_v48  ;;  %v2050_v48 = vld [vmem:[%s2714_s9 + $0x50] sm:$0xff]  }
 0x8d7   : > { %1267 = vmatprep.subr.bf16.mxu0 %v2122_v24 }
 0x8da   : > { %1268 = vmatpush2.bf16.msra.mxu0 %v2038_v49  ;;  %v2051_v49 = vld [vmem:[%s2714_s9 + $0x48] sm:$0xff]  }
 0x8db   : > { %1269 = vmatprep.subr.bf16.mxu0 %v2122_v24 }
 0x8de   : > { %1270 = vmatpush2.bf16.msra.mxu0 %v2039_v50  ;;  %v2052_v50 = vld [vmem:[%s2714_s9 + $0x40] sm:$0xff]  }
 0x8df   : > { %1271 = vmatprep.subr.bf16.mxu0 %v2122_v24 }
 0x8e2   : > { %1272 = vmatpush2.bf16.msra.mxu0 %v2040_v51 }
 0x924   : > { %v1991_v52 = vpop.permute.xlu1 %1990 }
 0x925   : > { %v1993_v55 = vunpack.i.h.bf16 %v1991_v52  ;;  %v1992_v56 = vunpack.i.l.bf16 %v1991_v52 }
 0x927   : > { %v1157_v59 = vsel %vm1155_vm9, %v2473_v33, %v1993_v55  ;;  %v1156_v6 = vsel %vm1155_vm9, %v2469_v32, %v1992_v56 }
 0x928   : > { %v1158_v12 = vpack.c.bf16 %v1157_v59, %v1156_v6 }
 0x975   : > { %v1136_v53 = vpop.f32.mrf.mxu0 }
 0x976   : > { %v1143_v38 = vmul.f32 2.0, %v1136_v53 }
 0x977   : > { %v1878_v54 = vpop.f32.mrf.mxu0 }
 0x978   : > { %v2546_v60 = vsub.f32 %v1143_v38, %v2469_v32 }
 0x979   : > { %v1139_v39 = vpop.f32.mrf.mxu0 }
 0x97a   : > { %v1144_v57 = vmul.f32 2.0, %v1139_v39 }
 0x97b   : > { %v1879_v58 = vpop.f32.mrf.mxu0 }
 0x97c   : > { %v2549_v61 = vsub.f32 %v1144_v57, %v2473_v33 }
 0x97e   : > { %v1159_v11 = vpack.c.bf16 %v2549_v61, %v2546_v60 }
 0x980   : > { %1747 = vmatprep.mubr.msk.bf16.mxu0 %vm1155_vm9, %v1159_v11 }
 0x981   : > { %1274 = vmatmul.mubr.bf16.vlgmr.msra.gmra.mxu0 %v1158_v12 }
 0xa41   : > { %v1275_v63 = vpop.f32.mrf.mxu0 }
 0xa42   : > { %v1276_v0 = vadd.f32 %v1734_v62, %v1275_v63 }
 0xa43   : > { %v1277_v3 = vpop.f32.mrf.mxu0 }
 0xa44   : > { %v1748_v7 = vmul.f32 -1.442695, %v1276_v0 }
 0xa45   : > { %v1278_v8 = vpop.f32.mrf.mxu0 }
 0xa46   : > { %2065 = vpow2.f32 %v1748_v7  ;;  %v1279_v9 = vadd.f32 %v1734_v62, %v1278_v8 }
 0xa47   : > { %v1280_v10 = vpop.f32.mrf.mxu0 }
 0xa48   : > { %v1749_v13 = vmul.f32 -1.442695, %v1279_v9 }
 0xa4a   : > { %2067 = vpow2.f32 %v1749_v13 }
 0xa53   : > { %v2066_v16 = vpop.eup %2065 }
 0xa54   : > { %v1288_v18 = vadd.f32 1.0, %v2066_v16 }
 0xa56   : > { %2069 = vrcp.f32 %v1288_v18 }
 0xa57   : > { %v2068_v19 = vpop.eup %2067 }
 0xa58   : > { %v1289_v20 = vadd.f32 1.0, %v2068_v19 }
 0xa5a   : > { %2071 = vrcp.f32 %v1289_v20 }
 0xa63   : > { %v2557_v21 = vpop.eup %2069 }
 0xa64   : > { %v2563_v23 = vmul.f32 %v2557_v21, %v2446_v27 }
 0xa67   : > { %v2559_v22 = vpop.eup %2071 }
 0xa68   : > { %v2567_v25 = vmul.f32 %v2559_v22, %v2452_v1 }
 0xa6a   : > { %v1999_v26 = vpack.i.bf16 %v2567_v25, %v2563_v23  ;;  %v1296_v28 = vpack.c.bf16 %v2567_v25, %v2563_v23 }
 0xa6c   : > { %2000 = vrot.lane.b32.xlu1 %v1999_v26, %s2119_s22  ;;  %1881 = vmatpush3.bf16.msra.mxu1 %v1296_v28  ;;  %v1552_v28 = vsub.f32 1.0, %v2557_v21 }
 0xa6d   : > { %1886 = vmatprep.subr.bf16.mxu1 %v2113_v4 }
 0xa6f   : > { %1883 = vmatmul.mubr.msk.bf16.vlgmr.msra.gmra.mxu1 %vm505_vm2, %v2287_v14 }
 0xa70   : > { %1888 = vmatprep.mubr.msk.bf16.mxu1 %vm2114_vm0, %v2113_v4  ;;  %v2042_v4 = vld [vmem:[%s2714_s9 + $0x30] sm:$0xff]  }
 0xade   : > { %v2001_v58 = vpop.permute.xlu1 %2000 }
 0xadf   : > { %v2003_v59 = vunpack.i.h.bf16 %v2001_v58  ;;  %v2002_v6 = vunpack.i.l.bf16 %v2001_v58 }
 0xae1   : > { %v1393_v63 = vsel %vm993_vm8, %v2473_v33, %v2003_v59  ;;  %v1392_v0 = vsel %vm993_vm8, %v2469_v32, %v2002_v6  ;;  %v1752_v32 = vld [vmem:[%s2715_s10] ss:$0 sm:$0xff] }
 0xb2f   : > { %v1331_v27 = vpop.f32.mrf.mxu1 }
 0xb31   : > { %v1884_v1 = vpop.f32.mrf.mxu1 }
 0xb32   : > { %v1550_v1 = vmul.f32 %v2557_v21, %v2463_v30 }
 0xb33   : > { %v1334_v29 = vpop.f32.mrf.mxu1 }
 0xb34   : > { %v1994_v2 = vpack.i.bf16 %v1334_v29, %v1331_v27  ;;  %v1338_v34 = vpack.c.bf16 %v1334_v29, %v1331_v27 }
 0xb35   : > { %v1885_v36 = vpop.f32.mrf.mxu1 }
 0xb36   : > { %1995 = vrot.lane.b32.xlu0 %v1994_v2, %s2119_s22  ;;  %1887 = vmatpush3.bf16.msra.mxu1 %v1338_v34  ;;  %v1553_v34 = vsub.f32 1.0, %v2559_v22 }
 0xb37   : > { %1507 = vmatprep.subr.bf16.mxu1 %v2122_v24 }
 0xb39   : > { %1889 = vmatmul.mubr.msk.bf16.vlgmr.msra.gmra.mxu1 %vm505_vm2, %v2287_v14 }
 0xb3a   : > { %1508 = vmatpush1.bf16.msra.mxu1 %v2041_v40  ;;  %v1551_v40 = vmul.f32 %v2559_v22, %v2465_v31 }
 0xb3b   : > { %1509 = vmatprep.subr.bf16.mxu1 %v2122_v24 }
 0xb3e   : > { %1510 = vmatpush1.bf16.msra.mxu1 %v2042_v4 }
 0xb3f   : > { %1511 = vmatprep.subr.bf16.mxu1 %v2122_v24 }
 0xb42   : > { %1512 = vmatpush1.bf16.msra.mxu1 %v2043_v42 }
 0xb43   : > { %1513 = vmatprep.subr.bf16.mxu1 %v2122_v24 }
 0xb46   : > { %1514 = vmatpush1.bf16.msra.mxu1 %v2044_v44 }
 0xb47   : > { %1515 = vmatprep.subr.bf16.mxu1 %v2122_v24 }
 0xba8   : > { %v1996_v41 = vpop.permute.xlu0 %1995 }
 0xba9   : > { %v1998_v15 = vunpack.i.h.bf16 %v1996_v41  ;;  %v1997_v17 = vunpack.i.l.bf16 %v1996_v41 }
 0xbab   : > { %v1402_v14 = vsel %vm993_vm8, %v2482_v35, %v1997_v17  ;;  %v1403_v5 = vsel %vm993_vm8, %v2484_v37, %v1998_v15  ;;  %v2045_v35 = vld [vmem:[%s2714_s9 + $0x18] sm:$0xff]   ;;  %v2046_v37 = vld [vmem:[%s2714_s9 + $0x10] sm:$0xff]  }
 0xbac   : > { %v2009_v43 = vpack.i.bf16 %v1403_v5, %v1402_v14  ;;  %1516 = vmatpush1.bf16.msra.mxu1 %v2045_v35 }
 0xbad   : > { %1517 = vmatprep.subr.bf16.mxu1 %v2122_v24 }
 0xbae   : > { %2010 = vrot.lane.b32.xlu1 %v2009_v43, %s2121_s24 }
 0xbb0   : > { %1518 = vmatpush1.bf16.msra.mxu1 %v2046_v37 }
 0xbb1   : > { %1519 = vmatprep.subr.bf16.mxu1 %v2122_v24 }
 0xbb4   : > { %1520 = vmatpush1.bf16.msra.mxu1 %v2047_v45 }
 0xbb5   : > { %1521 = vmatprep.subr.bf16.mxu1 %v2122_v24 }
 0xbb8   : > { %1522 = vmatpush1.bf16.msra.mxu1 %v2048_v46 }
 0xbb9   : > { %1531 = vmatprep.subr.bf16.mxu1 %v2122_v24 }
 0xbbc   : > { %1532 = vmatpush2.bf16.msra.mxu1 %v2049_v47 }
 0xbbd   : > { %1533 = vmatprep.subr.bf16.mxu1 %v2122_v24 }
 0xbc0   : > { %1534 = vmatpush2.bf16.msra.mxu1 %v2050_v48 }
 0xbc1   : > { %1535 = vmatprep.subr.bf16.mxu1 %v2122_v24 }
 0xbc4   : > { %1536 = vmatpush2.bf16.msra.mxu1 %v2051_v49 }
 0xbc5   : > { %1537 = vmatprep.subr.bf16.mxu1 %v2122_v24 }
 0xbc8   : > { %1538 = vmatpush2.bf16.msra.mxu1 %v2052_v50 }
 0xbf9   : > { %v1373_v51 = vpop.f32.mrf.mxu1 }
 0xbfa   : > { %v1380_v53 = vmul.f32 2.0, %v1373_v51 }
 0xbfb   : > { %v1890_v52 = vpop.f32.mrf.mxu1 }
 0xbfc   : > { %v1382_v38 = vsub.f32 %v1380_v53, %v2563_v23 }
 0xbfd   : > { %v1376_v54 = vpop.f32.mrf.mxu1 }
 0xbfe   : > { %v1381_v55 = vmul.f32 2.0, %v1376_v54 }
 0xbff   : > { %v1891_v56 = vpop.f32.mrf.mxu1 }
 0xc00   : > { %v1383_v39 = vsub.f32 %v1381_v55, %v2567_v25 }
 0xc02   : > { %v2004_v57 = vpack.i.bf16 %v1383_v39, %v1382_v38 }
 0xc04   : > { %2005 = vrot.lane.b32.xlu0 %v2004_v57, %s2119_s22 }
 0xc20   : > { %v2011_v24 = vpop.permute.xlu1 %2010 }
 0xc21   : > { %v2013_v11 = vunpack.i.h.bf16 %v2011_v24  ;;  %v2012_v12 = vunpack.i.l.bf16 %v2011_v24 }
 0xc23   : > { %v1423_v8 = vsel %vm1155_vm9, %v1393_v63, %v2013_v11  ;;  %v1422_v9 = vsel %vm1155_vm9, %v1392_v0, %v2012_v12 }
 0xc24   : > { %v1424_v18 = vpack.c.bf16 %v1423_v8, %v1422_v9 }
 0xc76   : > { %v2006_v62 = vpop.permute.xlu0 %2005 }
 0xc77   : > { %v2008_v3 = vunpack.i.h.bf16 %v2006_v62  ;;  %v2007_v7 = vunpack.i.l.bf16 %v2006_v62 }
 0xc79   : > { %v1413_v10 = vsel %vm993_vm8, %v2549_v61, %v2008_v3  ;;  %v1412_v13 = vsel %vm993_vm8, %v2546_v60, %v2007_v7 }
 0xc7a   : > { %v1425_v16 = vpack.c.bf16 %v1413_v10, %v1412_v13 }
 0xc7c   : > { %1765 = vmatprep.mubr.msk.bf16.mxu1 %vm1155_vm9, %v1425_v16 }
 0xc7d   : > { %1540 = vmatmul.mubr.bf16.vlgmr.msra.gmra.mxu1 %v1424_v18 }
 0xd3d   : > { %v1541_v33 = vpop.f32.mrf.mxu1 }
 0xd3e   : > { %v1542_v19 = vadd.f32 %v1752_v32, %v1541_v33 }
 0xd3f   : > { %v1543_v20 = vpop.f32.mrf.mxu1 }
 0xd40   : > { %2073 = vtanh.f32 %v1542_v19 }
 0xd41   : > { %v1544_v23 = vpop.f32.mrf.mxu1 }
 0xd42   : > { %v1545_v25 = vadd.f32 %v1752_v32, %v1544_v23 }
 0xd43   : > { %v1546_v26 = vpop.f32.mrf.mxu1 }
 0xd44   : > { %2075 = vtanh.f32 %v1545_v25 }
 0xd4d   : > { %v2074_v61 = vpop.eup %2073 }
 0xd4e   : > { %1556 = vrot.lane.b32.xlu0 %v2074_v61, %s2119_s22 }
 0xd51   : > { %v2076_v60 = vpop.eup %2075 }
 0xd52   : > { %1558 = vrot.lane.b32.xlu1 %v2076_v60, %s2119_s22  ;;  %s2727_s22 = sand.u32 1, %s2103_s18  }
 0xd53   : > { %s1578_s29 = scalar_lea.sflag [#allocation4], %s2727_s22 }
 0xdc0   : > { %v1557_v27 = vpop.permute.xlu0 %1556 }
 0xdc1   : > { %v1562_v29 = vmul.f32 %v1557_v27, %v1552_v28 }
 0xdc3   : > { %v1564_v2 = vadd.f32 %v1562_v29, %v1550_v1 }
 0xdc4   : > { %v1559_v36 = vpop.permute.xlu1 %1558 }
 0xdc5   : > { %v1563_v4 = vmul.f32 %v1559_v36, %v1553_v34  ;;  %1568 = vrot.lane.b32.xlu0 %v1564_v2, %s2726_s14 }
 0xdc7   : > { %v1565_v41 = vadd.f32 %v1563_v4, %v1551_v40 }
 0xdc9   : > { %1570 = vrot.lane.b32.xlu1 %v1565_v41, %s2726_s14 }
 0xe37   : > { %v1569_v15 = vpop.permute.xlu0 %1568 }
 0xe38   : > { %1766 = vst.msk [vmem:[%s2457_s15 + $0x10] sm:$0xff] %vm993_vm8, %v1569_v15 }
 0xe3b   : > { %v1571_v17 = vpop.permute.xlu1 %1570 }
 0xe3c   : > { %1767 = vst.msk [vmem:[%s2457_s15 + $0x18] sm:$0xff] %vm993_vm8, %v1571_v17 }
 0xe3d   : > { %s1775_s24 = sshll.u32 %s2211_s21, 8  ;;  %s1601_s30 = sshll.u32 %s2457_s15, 4  ;;  %s1602_s30 = int_to_ptr.vmem [resolvable:$true] %s1601_s30 }
 0xe3e   : > { %s1590_s25 = scalar_lea.hbm %s2716_s11, %s1775_s24  ;;  %s2123_s16 = smov 256  }
 0xe3f   : > { %1892 = sst [smem:[#allocation6]] (%p2229_p6), %s2123_s16  ;;  %s2124_s14 = smov 512  }
 0xe40   : > { %1893 = sst [smem:[#allocation6 + $0x1]] (%p2229_p6), %s2124_s14  ;;  %s2125_s22 = smov 2  }
 0xe41   : > { %1894 = sst [smem:[#allocation6 + $0x2]] (%p2229_p6), %s2125_s22  ;;  %s2126_s0 = smov 128  }
 0xe42   : > { %1895 = sst [smem:[#allocation6 + $0x3]] (%p2229_p6), %s2126_s0  ;;  %s2127_s21 = smov 8  }
 0xe43   : > { %1896 = sst [smem:[#allocation6 + $0x4]] (%p2229_p6), %s2126_s0  ;;  %s2128_s15 = smov 131072  }
 0xe44   : > { %1897 = sst [smem:[#allocation6 + $0x5]] (%p2229_p6), %s2127_s21  ;;  %s2129_s24 = smov 0  }
 0xe45   : > { %1898 = dma.general (%p2229_p6), %s1602_s30, 512, %s1590_s25, %s1578_s29, %s2128_s15, [#allocation6], %s2129_s24, 0  }
 0xe46 PF: > { %s1629_s12 = sand.u32 1, %s2099_s17   ;;  %p1901_p0 = pnand %p1696_p9, %p2233_p8 }
 0xe47   : > { %s1630_s13 = scalar_lea.sflag [#allocation4], %s1629_s12 }
 0xe48   : > { %p1902_p1 = pneg %p1901_p0 }
 0xe4a   : > { %2094 = dma.done.wait (%p1902_p1), %s1630_s13, 512  }
 0xe4b   : > { %2096 = vsyncadd (%p1902_p1), %s1630_s13, 4294966784  ;;  %p21_p2 = scmp.ge.s32.totalorder %s2215_s23, 4   ;;  %s2728_s17 = smov %s2103_s18 }
 0xe4c   : > { %s2729_s18 = smov %s2107_s19  ;;  %s2730_s19 = smov %s2227_s26 }
 0xe4d   : > { %s2731_s20 = smov %s2215_s23  ;;  %23 = sbr.rel (!%p21_p2) target bundleno = 5 (0x5), region = 152 }
 0xe52   :  { %1635 = vsyncpa [#allocation4], 1 }
 0xe53   :  { %1637 = vsyncpa [#allocation4 + $0x1], 1 }

</bundles_post_ra>
